<compile_context>
chip_gen: v5e
topology: v5e:2x2
jax: 0.10.0
libtpu: 0.0.40
codegen_flags: <defaults>
</compile_context>

<pallas_src>
import jax
import jax.numpy as jnp
from jax.experimental import pallas as pl
from jax.experimental.pallas import tpu as pltpu


def _round_up(n, m):
    return ((n + m - 1) // m) * m


def _fcn_kernel(*refs):
    """refs = (x_ref, w0_ref, ..., wL_ref, o_ref).

    One batch tile per grid step: full matmul + ReLU chain on the MXU/VPU.
    Weights are small, fully VMEM-resident tiles (same block every step).
    """
    x_ref = refs[0]
    w_refs = refs[1:-1]
    o_ref = refs[-1]

    # bf16 x bf16 -> f32 accumulate on the MXU.
    h = jnp.dot(x_ref[...], w_refs[0][...], preferred_element_type=jnp.float32)
    # TODO(synk): for very deep nets, stack the (h,h) middle weights into one
    # (depth-1, h, h) array and iterate with lax.fori_loop(unroll=True) to keep
    # the ref count constant; unnecessary at depth=3.
    for w_ref in w_refs[1:]:
        h = jnp.maximum(h, 0.0).astype(w_ref.dtype)          # ReLU (VPU) + bf16 cast
        h = jnp.dot(h, w_ref[...], preferred_element_type=jnp.float32)  # MXU
    o_ref[...] = h.astype(o_ref.dtype)


def fcn_norm_only_forward(x, weights_t, *, tile_b=1024, compute_dtype=jnp.bfloat16):
    """x: (B, C, H, W) or (B, F); weights_t: list of (in_features, out_features)."""
    b = x.shape[0]
    x_flat = x.reshape(b, -1)
    in_size = x_flat.shape[1]
    out_size = weights_t[-1].shape[1]

    # --- Lane-densify feature dims: pad every feature dim to a multiple of 128.
    # Zero padding is exact: padded activations are zero through every ReLU and
    # matmul, and padded output columns are sliced off below.
    in_p = _round_up(in_size, 128)
    padded_ws = []
    prev_p = in_p
    for w in weights_t:
        wi, wo = w.shape
        wo_p = _round_up(wo, 128)
        wp = jnp.zeros((prev_p, wo_p), compute_dtype).at[:wi, :wo].set(
            w.astype(compute_dtype))
        padded_ws.append(wp)
        prev_p = wo_p
    out_p = prev_p

    # --- Batch tiling: multiple of 8 sublanes; clamp so small batches don't
    # over-pad.  tile_b <= 1024 keeps double-buffered bf16 x tiles (<= 4 MiB)
    # comfortably inside every generation's scoped-VMEM default.
    tile_b = max(8, min(tile_b, _round_up(b, 8)))
    b_p = _round_up(b, tile_b)
    x_p = jnp.zeros((b_p, in_p), compute_dtype).at[:b, :in_size].set(
        x_flat.astype(compute_dtype))

    grid = (b_p // tile_b,)
    in_specs = [pl.BlockSpec((tile_b, in_p), lambda i: (i, 0))]
    # Weights: same block index every grid step -> DMA'd once, stay resident.
    in_specs += [pl.BlockSpec(w.shape, lambda i: (0, 0)) for w in padded_ws]
    out_specs = pl.BlockSpec((tile_b, out_p), lambda i: (i, 0))

    out_padded = pl.pallas_call(
        _fcn_kernel,
        out_shape=jax.ShapeDtypeStruct((b_p, out_p), x.dtype),
        grid=grid,
        in_specs=in_specs,
        out_specs=out_specs,
        compiler_params=pltpu.CompilerParams(
            dimension_semantics=("parallel",)),
    )(x_p, *padded_ws)

    return out_padded[:b, :out_size]


def init_weights(key, in_size, h_size, out_size, depth):
    """Deterministic kaiming_normal_(fan_in, relu) init; last layer *= 0.5.

    Returns weights already transposed to (in_features, out_features), so the
    kernel computes y = x @ W_t == PyTorch's x @ W.T (nn.Linear, bias=False).
    """
    dims = [in_size] + [h_size] * depth + [out_size]   # depth+1 Linear layers
    ws = []
    for i in range(depth + 1):
        fan_in, fan_out = dims[i], dims[i + 1]
        key, sub = jax.random.split(key)
        std = (2.0 / fan_in) ** 0.5                     # gain sqrt(2) / sqrt(fan_in)
        w = jax.random.normal(sub, (fan_out, fan_in), jnp.float32) * std
        if i == depth:
            w = w * 0.5                                 # self.layers[-1].weight *= 0.5
        ws.append(w.T)                                  # (in_features, out_features)
    return ws


def _reference_forward(x, weights_t, compute_dtype=jnp.bfloat16):
    """Pure-JAX reference mimicking the kernel's bf16-in / f32-accumulate chain."""
    h = x.reshape(x.shape[0], -1).astype(compute_dtype)
    h = jnp.dot(h, weights_t[0].astype(compute_dtype),
                preferred_element_type=jnp.float32)
    for w in weights_t[1:]:
        h = jnp.maximum(h, 0.0).astype(compute_dtype)
        h = jnp.dot(h, w.astype(compute_dtype),
                    preferred_element_type=jnp.float32)
    return h.astype(x.dtype)


if __name__ == "__main__":
    # Small shapes consistent with the module: x = (2, 4, 16, 16) -> in_size = 1024
    batch, C, H, W = 2, 4, 16, 16
    in_size = C * H * W
    h_size = 32
    out_size = 8
    depth = 3

    key = jax.random.PRNGKey(0)
    kx, kw = jax.random.split(key)
    x = jax.random.normal(kx, (batch, C, H, W), jnp.float32)
    weights_t = init_weights(kw, in_size, h_size, out_size, depth)

    out = fcn_norm_only_forward(x, weights_t)
    out = jax.block_until_ready(out)

    ref = _reference_forward(x, weights_t)
    ref_f32 = _reference_forward(x, weights_t, compute_dtype=jnp.float32)

    assert out.shape == (batch, out_size)
    # Tight check vs. bf16-compute reference; loose sanity check vs. full-f32 math.
    assert jnp.allclose(out, ref, atol=1e-2, rtol=1e-2)
    assert jnp.allclose(out, ref_f32, atol=5e-2, rtol=5e-2)

    print("KERNEL_OK")
</pallas_src>

<mosaic_0001>
module attributes {stable_mosaic.version = 11 : i64} {
  func.func @_fcn_kernel(%arg0: i32, %arg1: memref<8x1024xbf16, #tpu.memory_space<vmem>>, %arg2: memref<1024x128xbf16, #tpu.memory_space<vmem>>, %arg3: memref<128x128xbf16, #tpu.memory_space<vmem>>, %arg4: memref<128x128xbf16, #tpu.memory_space<vmem>>, %arg5: memref<128x128xbf16, #tpu.memory_space<vmem>>, %arg6: memref<8x128xf32, #tpu.memory_space<vmem>>) attributes {dimension_semantics = [#tpu.dimension_semantics<parallel>], iteration_bounds = array<i64: 1>, scalar_prefetch = 0 : i64, scratch_operands = 0 : i64, tpu.core_type = #tpu.core_type<tc>, window_params = [{transform_indices = @transform_0, window_bounds = array<i64: 8, 1024>}, {pipeline_mode = #tpu.pipeline_mode<synchronous>, transform_indices = @transform_1, window_bounds = array<i64: 1024, 128>}, {pipeline_mode = #tpu.pipeline_mode<synchronous>, transform_indices = @transform_2, window_bounds = array<i64: 128, 128>}, {pipeline_mode = #tpu.pipeline_mode<synchronous>, transform_indices = @transform_3, window_bounds = array<i64: 128, 128>}, {pipeline_mode = #tpu.pipeline_mode<synchronous>, transform_indices = @transform_4, window_bounds = array<i64: 128, 128>}, {transform_indices = @transform_5, window_bounds = array<i64: 8, 128>}]} {
    %c0 = arith.constant 0 : index
    %c0_0 = arith.constant 0 : index
    %0 = vector.load %arg1[%c0, %c0_0] : memref<8x1024xbf16, #tpu.memory_space<vmem>>, vector<8x1024xbf16>
    %c0_1 = arith.constant 0 : index
    %c0_2 = arith.constant 0 : index
    %1 = vector.load %arg2[%c0_1, %c0_2] : memref<1024x128xbf16, #tpu.memory_space<vmem>>, vector<1024x128xbf16>
    %cst = arith.constant dense<0.000000e+00> : vector<8x128xf32>
    %2 = tpu.matmul %0, %1, %cst {dimension_numbers = #tpu.dot_dimension_numbers<[1], [0], [0], [1], [0, 0, 1, 1], [], []>} : vector<8x1024xbf16>, vector<1024x128xbf16>, vector<8x128xf32> -> vector<8x128xf32>
    %cst_3 = arith.constant 0.000000e+00 : f32
    %3 = vector.broadcast %cst_3 : f32 to vector<8x128xf32>
    %4 = arith.maximumf %2, %3 : vector<8x128xf32>
    %5 = arith.truncf %4 : vector<8x128xf32> to vector<8x128xbf16>
    %c0_4 = arith.constant 0 : index
    %c0_5 = arith.constant 0 : index
    %6 = vector.load %arg3[%c0_4, %c0_5] : memref<128x128xbf16, #tpu.memory_space<vmem>>, vector<128x128xbf16>
    %cst_6 = arith.constant dense<0.000000e+00> : vector<8x128xf32>
    %7 = tpu.matmul %5, %6, %cst_6 {dimension_numbers = #tpu.dot_dimension_numbers<[1], [0], [0], [1], [0, 0, 1, 1], [], []>} : vector<8x128xbf16>, vector<128x128xbf16>, vector<8x128xf32> -> vector<8x128xf32>
    %cst_7 = arith.constant 0.000000e+00 : f32
    %8 = vector.broadcast %cst_7 : f32 to vector<8x128xf32>
    %9 = arith.maximumf %7, %8 : vector<8x128xf32>
    %10 = arith.truncf %9 : vector<8x128xf32> to vector<8x128xbf16>
    %c0_8 = arith.constant 0 : index
    %c0_9 = arith.constant 0 : index
    %11 = vector.load %arg4[%c0_8, %c0_9] : memref<128x128xbf16, #tpu.memory_space<vmem>>, vector<128x128xbf16>
    %cst_10 = arith.constant dense<0.000000e+00> : vector<8x128xf32>
    %12 = tpu.matmul %10, %11, %cst_10 {dimension_numbers = #tpu.dot_dimension_numbers<[1], [0], [0], [1], [0, 0, 1, 1], [], []>} : vector<8x128xbf16>, vector<128x128xbf16>, vector<8x128xf32> -> vector<8x128xf32>
    %cst_11 = arith.constant 0.000000e+00 : f32
    %13 = vector.broadcast %cst_11 : f32 to vector<8x128xf32>
    %14 = arith.maximumf %12, %13 : vector<8x128xf32>
    %15 = arith.truncf %14 : vector<8x128xf32> to vector<8x128xbf16>
    %c0_12 = arith.constant 0 : index
    %c0_13 = arith.constant 0 : index
    %16 = vector.load %arg5[%c0_12, %c0_13] : memref<128x128xbf16, #tpu.memory_space<vmem>>, vector<128x128xbf16>
    %cst_14 = arith.constant dense<0.000000e+00> : vector<8x128xf32>
    %17 = tpu.matmul %15, %16, %cst_14 {dimension_numbers = #tpu.dot_dimension_numbers<[1], [0], [0], [1], [0, 0, 1, 1], [], []>} : vector<8x128xbf16>, vector<128x128xbf16>, vector<8x128xf32> -> vector<8x128xf32>
    %c0_15 = arith.constant 0 : index
    %c0_16 = arith.constant 0 : index
    %18 = vector.load %arg6[%c0_15, %c0_16] : memref<8x128xf32, #tpu.memory_space<vmem>>, vector<8x128xf32>
    tpu.vector_store %arg6[%c0_15, %c0_16], %17 {strides = array<i32>} : memref<8x128xf32, #tpu.memory_space<vmem>>, vector<8x128xf32>,
    return
  }
  func.func @transform_0(%arg0: i32) -> (i32, i32) {
    %c0_i32 = arith.constant 0 : i32
    %c0_i32_0 = arith.constant 0 : i32
    return %arg0, %c0_i32 : i32, i32
  }
  func.func @transform_1(%arg0: i32) -> (i32, i32) {
    %c0_i32 = arith.constant 0 : i32
    %c0_i32_0 = arith.constant 0 : i32
    %c0_i32_1 = arith.constant 0 : i32
    return %c0_i32, %c0_i32_0 : i32, i32
  }
  func.func @transform_2(%arg0: i32) -> (i32, i32) {
    %c0_i32 = arith.constant 0 : i32
    %c0_i32_0 = arith.constant 0 : i32
    %c0_i32_1 = arith.constant 0 : i32
    return %c0_i32, %c0_i32_0 : i32, i32
  }
  func.func @transform_3(%arg0: i32) -> (i32, i32) {
    %c0_i32 = arith.constant 0 : i32
    %c0_i32_0 = arith.constant 0 : i32
    %c0_i32_1 = arith.constant 0 : i32
    return %c0_i32, %c0_i32_0 : i32, i32
  }
  func.func @transform_4(%arg0: i32) -> (i32, i32) {
    %c0_i32 = arith.constant 0 : i32
    %c0_i32_0 = arith.constant 0 : i32
    %c0_i32_1 = arith.constant 0 : i32
    return %c0_i32, %c0_i32_0 : i32, i32
  }
  func.func @transform_5(%arg0: i32) -> (i32, i32) {
    %c0_i32 = arith.constant 0 : i32
    %c0_i32_0 = arith.constant 0 : i32
    return %arg0, %c0_i32 : i32, i32
  }
}

</mosaic_0001>

<bundles_post_ra>
// kernel: tpu_custom_call.1
= control target key start
LH: loop header
LB: loop body
LE: loop exit
PB: predicated region body
PF: predicated region fallthrough
CT: control target
= control target key end

     0   :  { %10 = vsyncpa [#allocation3], 0  ;;  %s1658_s0 = inlined_call_operand.hbm [shape: bf16[8,1024], index: 0, kind: input, shape index: {}]   ;;  %s1659_s1 = inlined_call_operand.hbm [shape: bf16[1024,128], index: 1, kind: input, shape index: {}]   ;;  %s1660_s2 = inlined_call_operand.hbm [shape: bf16[128,128], index: 2, kind: input, shape index: {}]   ;;  %s1661_s3 = inlined_call_operand.hbm [shape: bf16[128,128], index: 3, kind: input, shape index: {}]   ;;  %s1662_s4 = inlined_call_operand.hbm [shape: bf16[128,128], index: 4, kind: input, shape index: {}]   ;;  %s1663_s5 = inlined_call_operand.hbm [shape: f32[8,128], index: 5, kind: output, shape index: {}]  }
   0x1   :  { %11 = vsyncpa [#allocation6], 0 }
   0x2   :  { %12 = vsyncpa [#allocation9], 0  ;;  %s29_s20 = sshll.u32 %s1659_s1, 4  ;;  %s30_s20 = int_to_ptr.hbm [resolvable:$true] %s29_s20 }
   0x3   :  { %13 = vsyncpa [#allocation4], 0  ;;  %s1602_s21 = smov [#allocation5]   ;;  %s55_s25 = sshll.u32 %s1661_s3, 4  ;;  %s56_s25 = int_to_ptr.hbm [resolvable:$true] %s55_s25 }
   0x4   :  { %s31_s22 = sshll.u32 %s1602_s21, 4  ;;  %s1603_s26 = smov 64   ;;  %s32_s22 = int_to_ptr.vmem [resolvable:$true] %s31_s22 }
   0x5   :  { %s1604_s27 = smov 4   ;;  %s1605_s28 = smov [#allocation8]  }
   0x6   :  { %37 = dma.hbm_to_vmem [thread:$0]  %s30_s20, 8192, %s32_s22, [#allocation6], %s1603_s26, %s1603_s26, %s1604_s27  }
   0x7   :  { %s57_s29 = sshll.u32 %s1605_s28, 4  ;;  %s19_s7 = sshll.u32 %s1658_s0, 4  ;;  %s58_s29 = int_to_ptr.vmem [resolvable:$true] %s57_s29  ;;  %s20_s7 = int_to_ptr.hbm [resolvable:$true] %s19_s7 }
   0x8   :  { %63 = dma.hbm_to_vmem [thread:$0]  %s56_s25, 1024, %s58_s29, [#allocation9], %s1603_s26, %s1603_s26, %s1604_s27  }
   0x9   :  { %s42_s9 = sshll.u32 %s1660_s2, 4  ;;  %s1606_s10 = smov [#allocation2]   ;;  %s43_s9 = int_to_ptr.hbm [resolvable:$true] %s42_s9 }
   0xa   :  { %s21_s11 = sshll.u32 %s1606_s10, 4  ;;  %s1607_s3 = smov [#allocation7]   ;;  %s22_s11 = int_to_ptr.vmem [resolvable:$true] %s21_s11 }
   0xb   :  { %24 = dma.hbm_to_vmem [thread:$0]  %s20_s7, 512, %s22_s11, [#allocation3]  }
   0xc   :  { %s44_s12 = sshll.u32 %s1607_s3, 4  ;;  %s68_s15 = sshll.u32 %s1662_s4, 4  ;;  %s45_s12 = int_to_ptr.vmem [resolvable:$true] %s44_s12  ;;  %s69_s15 = int_to_ptr.hbm [resolvable:$true] %s68_s15 }
   0xd   :  { %50 = dma.hbm_to_vmem [thread:$0]  %s43_s9, 1024, %s45_s12, [#allocation6], %s1603_s26, %s1603_s26, %s1604_s27  }
   0xe   :  { %s1608_s0 = smov [#allocation10]  }
   0xf   :  { %s70_s16 = sshll.u32 %s1608_s0, 4  ;;  %s71_s16 = int_to_ptr.vmem [resolvable:$true] %s70_s16 }
  0x10   :  { %76 = dma.hbm_to_vmem [thread:$0]  %s69_s15, 1024, %s71_s16, [#allocation9], %s1603_s26, %s1603_s26, %s1604_s27  }
  0x11   :  { %1594 = dma.done.wait [#allocation3], 512  }
  0x12   :  { %1595 = vsyncadd [#allocation3], 4294966784 }
  0x13   :  { %1596 = dma.done.wait [#allocation6], 9216  }
  0x14   :  { %1597 = vsyncadd [#allocation6], 4294958080 }
  0x15   :  { %1598 = dma.done.wait [#allocation9], 2048  }
  0x16   :  { %1599 = vsyncadd [#allocation9], 4294965248  ;;  %v1361_v0 = vld [vmem:[#allocation5 + $0x38] sm:$0xff]  ;;  %v1360_v4 = vld [vmem:[#allocation5 + $0x30] sm:$0xff]  ;;  %s1609_s2 = smov [#allocation11]   ;;  %s990_s19 = sshll.u32 %s1663_s5, 4  ;;  %s991_s19 = int_to_ptr.hbm [resolvable:$true] %s990_s19 }
  0x17   :  { %v1369_v1 = vld [vmem:[#allocation5 + $0x78] sm:$0xff]  ;;  %641 = vmatpush.bf16.msra.mxu0 %v1361_v0  ;;  %v1368_v5 = vld [vmem:[#allocation5 + $0x70] sm:$0xff]  ;;  %v1359_v8 = vld [vmem:[#allocation5 + $0x28] sm:$0xff]  ;;  %s988_s4 = sshll.u32 %s1609_s2, 4  ;;  %s989_s4 = int_to_ptr.vmem [resolvable:$true] %s988_s4 }
  0x18   :  { %v1377_v2 = vld [vmem:[#allocation5 + $0xb8] sm:$0xff]  ;;  %654 = vmatpush.bf16.msra.mxu1 %v1369_v1  ;;  %v1376_v6 = vld [vmem:[#allocation5 + $0xb0] sm:$0xff]  ;;  %v1367_v9 = vld [vmem:[#allocation5 + $0x68] sm:$0xff] }
  0x19   :  { %v1385_v3 = vld [vmem:[#allocation5 + $0xf8] sm:$0xff]  ;;  %667 = vmatpush.bf16.msra.mxu2 %v1377_v2  ;;  %v1384_v7 = vld [vmem:[#allocation5 + $0xf0] sm:$0xff]  ;;  %v1375_v10 = vld [vmem:[#allocation5 + $0xa8] sm:$0xff] }
  0x1a   :  { %680 = vmatpush.bf16.msra.mxu3 %v1385_v3  ;;  %v1383_v11 = vld [vmem:[#allocation5 + $0xe8] sm:$0xff]  ;;  %v1358_v12 = vld [vmem:[#allocation5 + $0x20] sm:$0xff]  ;;  %v1357_v16 = vld [vmem:[#allocation5 + $0x18] sm:$0xff] }
  0x1b   :  { %642 = vmatpush.bf16.msra.mxu0 %v1360_v4  ;;  %v1366_v13 = vld [vmem:[#allocation5 + $0x60] sm:$0xff]  ;;  %v1365_v17 = vld [vmem:[#allocation5 + $0x58] sm:$0xff]  ;;  %v1356_v20 = vld [vmem:[#allocation5 + $0x10] sm:$0xff] }
  0x1c   :  { %655 = vmatpush.bf16.msra.mxu1 %v1368_v5  ;;  %v1374_v14 = vld [vmem:[#allocation5 + $0xa0] sm:$0xff]  ;;  %v1373_v18 = vld [vmem:[#allocation5 + $0x98] sm:$0xff]  ;;  %v1364_v21 = vld [vmem:[#allocation5 + $0x50] sm:$0xff] }
  0x1d   :  { %668 = vmatpush.bf16.msra.mxu2 %v1376_v6  ;;  %v1382_v15 = vld [vmem:[#allocation5 + $0xe0] sm:$0xff]  ;;  %v1381_v19 = vld [vmem:[#allocation5 + $0xd8] sm:$0xff]  ;;  %v1372_v22 = vld [vmem:[#allocation5 + $0x90] sm:$0xff] }
  0x1e   :  { %681 = vmatpush.bf16.msra.mxu3 %v1384_v7  ;;  %v1380_v23 = vld [vmem:[#allocation5 + $0xd0] sm:$0xff]  ;;  %v1355_v24 = vld [vmem:[#allocation5 + $0x8] sm:$0xff]  ;;  %v97_v29 = vld [vmem:[#allocation2] sm:$0xff] }
  0x1f   :  { %643 = vmatpush.bf16.msra.mxu0 %v1359_v8  ;;  %v1363_v25 = vld [vmem:[#allocation5 + $0x48] sm:$0xff]  ;;  %v1354_v30 = vld [vmem:[#allocation5] sm:$0xff]  ;;  %v233_v33 = vunpack.c.l.b16 %v97_v29  ;;  %v234_v37 = vunpack.c.h.b16 %v97_v29  ;;  %v1393_v38 = vld [vmem:[#allocation5 + $0x138] sm:$0xff] }
  0x20   :  { %656 = vmatpush.bf16.msra.mxu1 %v1367_v9  ;;  %v1371_v26 = vld [vmem:[#allocation5 + $0x88] sm:$0xff]  ;;  %v1362_v31 = vld [vmem:[#allocation5 + $0x40] sm:$0xff]  ;;  %v1401_v39 = vld [vmem:[#allocation5 + $0x178] sm:$0xff] }
  0x21   :  { %669 = vmatpush.bf16.msra.mxu2 %v1375_v10  ;;  %v1379_v27 = vld [vmem:[#allocation5 + $0xc8] sm:$0xff]  ;;  %v1370_v34 = vld [vmem:[#allocation5 + $0x80] sm:$0xff]  ;;  %v1409_v40 = vld [vmem:[#allocation5 + $0x1b8] sm:$0xff]  ;;  %v241_v43 = vpack.c.b16 %v233_v33, %v233_v33  ;;  %v242_v45 = vpack.c.b16 %v234_v37, %v234_v37 }
  0x22   :  { %682 = vmatpush.bf16.msra.mxu3 %v1383_v11  ;;  %v98_v28 = vld [vmem:[#allocation2 + $0x8] sm:$0xff]  ;;  %v1378_v35 = vld [vmem:[#allocation5 + $0xc0] sm:$0xff]  ;;  %v1417_v41 = vld [vmem:[#allocation5 + $0x1f8] sm:$0xff] }
  0x23   :  { %644 = vmatpush.bf16.msra.mxu0 %v1358_v12  ;;  %v235_v32 = vunpack.c.l.b16 %v98_v28  ;;  %v236_v36 = vunpack.c.h.b16 %v98_v28  ;;  %v1392_v46 = vld [vmem:[#allocation5 + $0x130] sm:$0xff]  ;;  %v1391_v50 = vld [vmem:[#allocation5 + $0x128] sm:$0xff]  ;;  %v1390_v54 = vld [vmem:[#allocation5 + $0x120] sm:$0xff] }
  0x24   :  { %657 = vmatpush.bf16.msra.mxu1 %v1366_v13  ;;  %v1400_v47 = vld [vmem:[#allocation5 + $0x170] sm:$0xff]  ;;  %v1399_v51 = vld [vmem:[#allocation5 + $0x168] sm:$0xff]  ;;  %v1398_v55 = vld [vmem:[#allocation5 + $0x160] sm:$0xff] }
  0x25   :  { %670 = vmatpush.bf16.msra.mxu2 %v1374_v14  ;;  %v243_v42 = vpack.c.b16 %v235_v32, %v235_v32  ;;  %v244_v44 = vpack.c.b16 %v236_v36, %v236_v36  ;;  %v1408_v48 = vld [vmem:[#allocation5 + $0x1b0] sm:$0xff]  ;;  %v1407_v52 = vld [vmem:[#allocation5 + $0x1a8] sm:$0xff]  ;;  %v1406_v56 = vld [vmem:[#allocation5 + $0x1a0] sm:$0xff] }
  0x26   :  { %683 = vmatpush.bf16.msra.mxu3 %v1382_v15  ;;  %v1416_v49 = vld [vmem:[#allocation5 + $0x1f0] sm:$0xff]  ;;  %v1415_v53 = vld [vmem:[#allocation5 + $0x1e8] sm:$0xff]  ;;  %v1414_v57 = vld [vmem:[#allocation5 + $0x1e0] sm:$0xff] }
  0x27   :  { %645 = vmatpush.bf16.msra.mxu0 %v1357_v16  ;;  %v1389_v58 = vld [vmem:[#allocation5 + $0x118] sm:$0xff]  ;;  %v1388_v62 = vld [vmem:[#allocation5 + $0x110] sm:$0xff]  ;;  %v1387_v2 = vld [vmem:[#allocation5 + $0x108] sm:$0xff] }
  0x28   :  { %658 = vmatpush.bf16.msra.mxu1 %v1365_v17  ;;  %v1397_v59 = vld [vmem:[#allocation5 + $0x158] sm:$0xff]  ;;  %v1396_v63 = vld [vmem:[#allocation5 + $0x150] sm:$0xff]  ;;  %v1395_v3 = vld [vmem:[#allocation5 + $0x148] sm:$0xff] }
  0x29   :  { %671 = vmatpush.bf16.msra.mxu2 %v1373_v18  ;;  %v1405_v60 = vld [vmem:[#allocation5 + $0x198] sm:$0xff]  ;;  %v1404_v0 = vld [vmem:[#allocation5 + $0x190] sm:$0xff]  ;;  %v1403_v5 = vld [vmem:[#allocation5 + $0x188] sm:$0xff] }
  0x2a   :  { %684 = vmatpush.bf16.msra.mxu3 %v1381_v19  ;;  %v1413_v61 = vld [vmem:[#allocation5 + $0x1d8] sm:$0xff]  ;;  %v1412_v1 = vld [vmem:[#allocation5 + $0x1d0] sm:$0xff]  ;;  %v1411_v6 = vld [vmem:[#allocation5 + $0x1c8] sm:$0xff] }
  0x2b   :  { %646 = vmatpush.bf16.msra.mxu0 %v1356_v20  ;;  %v99_v4 = vld [vmem:[#allocation2 + $0x10] sm:$0xff]  ;;  %v100_v7 = vld [vmem:[#allocation2 + $0x18] sm:$0xff]  ;;  %v1386_v10 = vld [vmem:[#allocation5 + $0x100] sm:$0xff] }
  0x2c   :  { %659 = vmatpush.bf16.msra.mxu1 %v1364_v21  ;;  %v237_v8 = vunpack.c.l.b16 %v99_v4  ;;  %v238_v9 = vunpack.c.h.b16 %v99_v4  ;;  %v1394_v11 = vld [vmem:[#allocation5 + $0x140] sm:$0xff]  ;;  %v239_v12 = vunpack.c.l.b16 %v100_v7  ;;  %v240_v13 = vunpack.c.h.b16 %v100_v7  ;;  %v1425_v20 = vld [vmem:[#allocation7 + $0x38] sm:$0xff]  ;;  %v1424_v21 = vld [vmem:[#allocation7 + $0x30] sm:$0xff] }
  0x2d   :  { %672 = vmatpush.bf16.msra.mxu2 %v1372_v22  ;;  %v1402_v14 = vld [vmem:[#allocation5 + $0x180] sm:$0xff]  ;;  %v1423_v22 = vld [vmem:[#allocation7 + $0x28] sm:$0xff]  ;;  %v1432_v37 = vld [vmem:[#allocation8 + $0x30] sm:$0xff] }
  0x2e   :  { %685 = vmatpush.bf16.msra.mxu3 %v1380_v23  ;;  %v1410_v15 = vld [vmem:[#allocation5 + $0x1c0] sm:$0xff]  ;;  %v245_v16 = vpack.c.b16 %v237_v8, %v237_v8  ;;  %v246_v17 = vpack.c.b16 %v238_v9, %v238_v9  ;;  %v247_v18 = vpack.c.b16 %v239_v12, %v239_v12  ;;  %v248_v19 = vpack.c.b16 %v240_v13, %v240_v13  ;;  %v1419_v28 = vld [vmem:[#allocation7 + $0x8] sm:$0xff] }
  0x2f   :  { %647 = vmatpush.bf16.msra.mxu0 %v1355_v24  ;;  %v1422_v23 = vld [vmem:[#allocation7 + $0x20] sm:$0xff]  ;;  %v1421_v24 = vld [vmem:[#allocation7 + $0x18] sm:$0xff] }
  0x30   :  { %660 = vmatpush.bf16.msra.mxu1 %v1363_v25  ;;  %v1418_v32 = vld [vmem:[#allocation7] sm:$0xff] }
  0x31   :  { %673 = vmatpush.bf16.msra.mxu2 %v1371_v26  ;;  %v1420_v26 = vld [vmem:[#allocation7 + $0x10] sm:$0xff]  ;;  %v1434_v8 = vld [vmem:[#allocation10] sm:$0xff] }
  0x32   :  { %686 = vmatpush.bf16.msra.mxu3 %v1379_v27 }
  0x33   :  { %648 = vmatpush.bf16.msra.mxu0 %v1354_v30 }
  0x34   :  { %661 = vmatpush.bf16.msra.mxu1 %v1362_v31 }
  0x35   :  { %674 = vmatpush.bf16.msra.mxu2 %v1370_v34  ;;  %v1433_v34 = vld [vmem:[#allocation8 + $0x38] sm:$0xff] }
  0x36   :  { %687 = vmatpush.bf16.msra.mxu3 %v1378_v35  ;;  %649 = vmatmul.bf16.vlgmr.msra.gmra.mxu0 %v241_v43 }
  0x37   :  { %693 = vmatpush.bf16.msrb.mxu0 %v1393_v38  ;;  %662 = vmatmul.bf16.vlgmr.msra.gmra.mxu1 %v242_v45  ;;  %v1431_v38 = vld [vmem:[#allocation8 + $0x28] sm:$0xff] }
  0x38   :  { %706 = vmatpush.bf16.msrb.mxu1 %v1401_v39  ;;  %675 = vmatmul.bf16.vlgmr.msra.gmra.mxu2 %v243_v42  ;;  %v1429_v42 = vld [vmem:[#allocation8 + $0x18] sm:$0xff] }
  0x39   :  { %719 = vmatpush.bf16.msrb.mxu2 %v1409_v40  ;;  %688 = vmatmul.bf16.vlgmr.msra.gmra.mxu3 %v244_v44  ;;  %v1430_v40 = vld [vmem:[#allocation8 + $0x20] sm:$0xff] }
  0x3a   :  { %732 = vmatpush.bf16.msrb.mxu3 %v1417_v41 }
  0x3b   :  { %694 = vmatpush.bf16.msrb.mxu0 %v1392_v46 }
  0x3c   :  { %707 = vmatpush.bf16.msrb.mxu1 %v1400_v47  ;;  %v1428_v47 = vld [vmem:[#allocation8 + $0x10] sm:$0xff] }
  0x3d   :  { %720 = vmatpush.bf16.msrb.mxu2 %v1408_v48 }
  0x3e   :  { %733 = vmatpush.bf16.msrb.mxu3 %v1416_v49  ;;  %v1427_v49 = vld [vmem:[#allocation8 + $0x8] sm:$0xff] }
  0x3f   :  { %695 = vmatpush.bf16.msrb.mxu0 %v1391_v50 }
  0x40   :  { %708 = vmatpush.bf16.msrb.mxu1 %v1399_v51 }
  0x41   :  { %721 = vmatpush.bf16.msrb.mxu2 %v1407_v52 }
  0x42   :  { %734 = vmatpush.bf16.msrb.mxu3 %v1415_v53 }
  0x43   :  { %696 = vmatpush.bf16.msrb.mxu0 %v1390_v54 }
  0x44   :  { %709 = vmatpush.bf16.msrb.mxu1 %v1398_v55 }
  0x45   :  { %722 = vmatpush.bf16.msrb.mxu2 %v1406_v56 }
  0x46   :  { %735 = vmatpush.bf16.msrb.mxu3 %v1414_v57 }
  0x47   :  { %697 = vmatpush.bf16.msrb.mxu0 %v1389_v58 }
  0x48   :  { %710 = vmatpush.bf16.msrb.mxu1 %v1397_v59 }
  0x49   :  { %723 = vmatpush.bf16.msrb.mxu2 %v1405_v60  ;;  %v1426_v60 = vld [vmem:[#allocation8] sm:$0xff] }
  0x4a   :  { %736 = vmatpush.bf16.msrb.mxu3 %v1413_v61  ;;  %v1441_v61 = vld [vmem:[#allocation10 + $0x38] sm:$0xff] }
  0x4b   :  { %698 = vmatpush.bf16.msrb.mxu0 %v1388_v62  ;;  %v1440_v62 = vld [vmem:[#allocation10 + $0x30] sm:$0xff] }
  0x4c   :  { %711 = vmatpush.bf16.msrb.mxu1 %v1396_v63  ;;  %v1439_v63 = vld [vmem:[#allocation10 + $0x28] sm:$0xff] }
  0x4d   :  { %724 = vmatpush.bf16.msrb.mxu2 %v1404_v0  ;;  %v1438_v0 = vld [vmem:[#allocation10 + $0x20] sm:$0xff] }
  0x4e   :  { %737 = vmatpush.bf16.msrb.mxu3 %v1412_v1  ;;  %v1437_v1 = vld [vmem:[#allocation10 + $0x18] sm:$0xff] }
  0x4f   :  { %699 = vmatpush.bf16.msrb.mxu0 %v1387_v2  ;;  %v1436_v2 = vld [vmem:[#allocation10 + $0x10] sm:$0xff] }
  0x50   :  { %712 = vmatpush.bf16.msrb.mxu1 %v1395_v3  ;;  %v1435_v3 = vld [vmem:[#allocation10 + $0x8] sm:$0xff] }
  0x51   :  { %725 = vmatpush.bf16.msrb.mxu2 %v1403_v5 }
  0x52   :  { %738 = vmatpush.bf16.msrb.mxu3 %v1411_v6 }
  0x53   :  { %700 = vmatpush.bf16.msrb.mxu0 %v1386_v10 }
  0x54   :  { %713 = vmatpush.bf16.msrb.mxu1 %v1394_v11 }
  0x55   :  { %726 = vmatpush.bf16.msrb.mxu2 %v1402_v14 }
  0x56   :  { %739 = vmatpush.bf16.msrb.mxu3 %v1410_v15  ;;  %701 = vmatmul.bf16.vlgmr.msrb.gmra.mxu0 %v245_v16 }
  0x57   :  { %714 = vmatmul.bf16.vlgmr.msrb.gmra.mxu1 %v246_v17  ;;  %811 = vmatpush.bf16.msra.mxu0 %v1425_v20 }
  0x58   :  { %727 = vmatmul.bf16.vlgmr.msrb.gmra.mxu2 %v247_v18  ;;  %890 = vmatpush.bf16.msra.mxu1 %v1433_v34 }
  0x59   :  { %740 = vmatmul.bf16.vlgmr.msrb.gmra.mxu3 %v248_v19  ;;  %969 = vmatpush.bf16.msra.mxu2 %v1441_v61 }
  0x5b   :  { %812 = vmatpush.bf16.msra.mxu0 %v1424_v21 }
  0x5c   :  { %891 = vmatpush.bf16.msra.mxu1 %v1432_v37 }
  0x5d   :  { %970 = vmatpush.bf16.msra.mxu2 %v1440_v62 }
  0x5f   :  { %813 = vmatpush.bf16.msra.mxu0 %v1423_v22 }
  0x60   :  { %892 = vmatpush.bf16.msra.mxu1 %v1431_v38 }
  0x61   :  { %971 = vmatpush.bf16.msra.mxu2 %v1439_v63 }
  0x63   :  { %814 = vmatpush.bf16.msra.mxu0 %v1422_v23 }
  0x64   :  { %893 = vmatpush.bf16.msra.mxu1 %v1430_v40 }
  0x65   :  { %972 = vmatpush.bf16.msra.mxu2 %v1438_v0 }
  0x67   :  { %815 = vmatpush.bf16.msra.mxu0 %v1421_v24 }
  0x68   :  { %894 = vmatpush.bf16.msra.mxu1 %v1429_v42 }
  0x69   :  { %973 = vmatpush.bf16.msra.mxu2 %v1437_v1 }
  0x6b   :  { %816 = vmatpush.bf16.msra.mxu0 %v1420_v26 }
  0x6c   :  { %895 = vmatpush.bf16.msra.mxu1 %v1428_v47 }
  0x6d   :  { %974 = vmatpush.bf16.msra.mxu2 %v1436_v2 }
  0x6f   :  { %817 = vmatpush.bf16.msra.mxu0 %v1419_v28 }
  0x70   :  { %896 = vmatpush.bf16.msra.mxu1 %v1427_v49 }
  0x71   :  { %975 = vmatpush.bf16.msra.mxu2 %v1435_v3 }
  0x73   :  { %818 = vmatpush.bf16.msra.mxu0 %v1418_v32 }
  0x74   :  { %897 = vmatpush.bf16.msra.mxu1 %v1426_v60 }
  0x75   :  { %976 = vmatpush.bf16.msra.mxu2 %v1434_v8 }
  0xb3   :  { %v650_v25 = vpop.f32.mrf.mxu0 }
  0xb4   :  { %v663_v27 = vpop.f32.mrf.mxu1 }
  0xb5   :  { %v664_v39 = vadd.f32 %v663_v27, %v650_v25 }
  0xbb   :  { %v676_v29 = vpop.f32.mrf.mxu2  ;;  %v652_v31 = vpop.f32.mrf.mxu0 }
  0xbc   :  { %v689_v30 = vpop.f32.mrf.mxu3  ;;  %v665_v33 = vpop.f32.mrf.mxu1  ;;  %v677_v41 = vadd.f32 %v676_v29, %v664_v39 }
  0xbe   :  { %v690_v43 = vadd.f32 %v689_v30, %v677_v41 }
  0xc3   :  { %v678_v35 = vpop.f32.mrf.mxu2 }
  0xc4   :  { %v691_v36 = vpop.f32.mrf.mxu3 }
  0xd3   :  { %v702_v44 = vpop.f32.mrf.mxu0 }
  0xd4   :  { %v715_v45 = vpop.f32.mrf.mxu1  ;;  %v703_v46 = vadd.f32 %v702_v44, %v690_v43 }
  0xd6   :  { %v716_v48 = vadd.f32 %v715_v45, %v703_v46 }
  0xdb   :  { %v728_v50 = vpop.f32.mrf.mxu2  ;;  %v704_v53 = vpop.f32.mrf.mxu0 }
  0xdc   :  { %v741_v51 = vpop.f32.mrf.mxu3  ;;  %v729_v52 = vadd.f32 %v728_v50, %v716_v48  ;;  %v717_v54 = vpop.f32.mrf.mxu1 }
  0xde   :  { %v742_v55 = vadd.f32 %v741_v51, %v729_v52 }
  0xe0   :  { %v745_v56 = vmax.f32 %v742_v55, 0.0 }
  0xe2   :  { %v746_v57 = vpack.c.bf16 %v745_v56, %v745_v56 }
  0xe3   :  { %v730_v58 = vpop.f32.mrf.mxu2 }
  0xe4   :  { %v743_v59 = vpop.f32.mrf.mxu3  ;;  %819 = vmatmul.bf16.vlgmr.msra.gmra.mxu0 %v746_v57 }
 0x161   :  { %v820_v4 = vpop.f32.mrf.mxu0 }
 0x162   :  { %v824_v5 = vmax.f32 %v820_v4, 0.0 }
 0x164   :  { %v825_v6 = vpack.c.bf16 %v824_v5, %v824_v5 }
 0x166   :  { %898 = vmatmul.bf16.vlgmr.msra.gmra.mxu1 %v825_v6 }
 0x169   :  { %v822_v7 = vpop.f32.mrf.mxu0 }
 0x1e3   :  { %v899_v9 = vpop.f32.mrf.mxu1 }
 0x1e4   :  { %v903_v10 = vmax.f32 %v899_v9, 0.0 }
 0x1e6   :  { %v904_v11 = vpack.c.bf16 %v903_v10, %v903_v10 }
 0x1e8   :  { %977 = vmatmul.bf16.vlgmr.msra.gmra.mxu2 %v904_v11 }
 0x1eb   :  { %v901_v12 = vpop.f32.mrf.mxu1 }
 0x26b   :  { %v978_v13 = vpop.f32.mrf.mxu2 }
 0x26c   :  { %982 = vst [vmem:[#allocation11] sm:$0xff] %v978_v13 }
 0x26d   :  { %993 = dma.vmem_to_hbm [thread:$0]  %s989_s4, 128, %s991_s19, [#allocation4]  }
 0x273   :  { %v980_v14 = vpop.f32.mrf.mxu2 }
 0x274   :  { %1600 = dma.done.wait [#allocation4], 128  }
 0x275   :  { %1601 = vsyncadd [#allocation4], 4294967168 }
 0x276   :  { %998 = vsyncpa [#allocation3], 1 }
 0x277   :  { %999 = vsyncpa [#allocation6], 1 }
 0x278   :  { %1000 = vsyncpa [#allocation9], 1 }
 0x279   :  { %1001 = vsyncpa [#allocation4], 1 }

</bundles_post_ra>
